<compile_context>
chip_gen: v7x
topology: tpu7x:2x2x1
jax: 0.10.0
libtpu: 0.0.40
codegen_flags: <defaults>
</compile_context>

<pallas_src>
import functools

import jax
import jax.numpy as jnp
from jax.experimental import pallas as pl
from jax.experimental.pallas import tpu as pltpu


def _slc_kernel(x_ref, w_ref, b_ref, gamma_ref, beta_ref, o_ref, *, eps):
    # x tile: (tm, D) in f32
    x = x_ref[...].astype(jnp.float32)
    d = x.shape[-1]

    # ---- LayerNorm (unbiased std, eps added to std — matches the reference) ----
    mean = jnp.mean(x, axis=-1, keepdims=True)
    centered = x - mean
    var_unbiased = jnp.sum(centered * centered, axis=-1, keepdims=True) / (d - 1)
    std = jnp.sqrt(var_unbiased)
    inv = pl.reciprocal(std + eps, approx=True)          # EUP, not VALU divide
    xn = gamma_ref[...] * (centered * inv) + beta_ref[...]

    # ---- sublayer: Linear(D -> D) on the MXU, bf16 operands, f32 accumulate ----
    y = jnp.dot(xn.astype(jnp.bfloat16), w_ref[...],
                preferred_element_type=jnp.float32) + b_ref[...]

    # TODO(synk): training-mode dropout (p=0.1) omitted; inference (identity) used.

    # ---- residual add ----
    o_ref[...] = (x + y).astype(o_ref.dtype)


@functools.partial(jax.jit, static_argnames=("eps", "tm"))
def sublayer_connection(x, gamma, beta, w, b, *, eps=1e-6, tm=256):
    """x: (B, S, D) f32. gamma/beta/b: (D,). w: (D, D). D must be a multiple of 128."""
    B, S, D = x.shape
    assert D >= 2, "LayerNorm with unbiased std needs D >= 2"
    assert D % 128 == 0, "hidden dim must be a multiple of 128 for lane-dense tiles"

    M = B * S
    # Effective row tile: multiple of 8 (sublanes), no larger than the padded row count.
    M8 = ((M + 7) // 8) * 8
    tm_eff = max(8, (min(tm, M8) // 8) * 8)
    Mp = ((M8 + tm_eff - 1) // tm_eff) * tm_eff

    x2 = x.reshape(M, D)
    if Mp > M:
        x2 = jnp.pad(x2, ((0, Mp - M), (0, 0)))

    w_bf16 = w.astype(jnp.bfloat16)        # bf16 weight: half VMEM/HBM, full-rate MXU
    gamma2 = gamma.reshape(1, D).astype(jnp.float32)
    beta2 = beta.reshape(1, D).astype(jnp.float32)
    b2 = b.reshape(1, D).astype(jnp.float32)

    out = pl.pallas_call(
        functools.partial(_slc_kernel, eps=eps),
        out_shape=jax.ShapeDtypeStruct((Mp, D), x.dtype),
        grid_spec=pltpu.PrefetchScalarGridSpec(
            num_scalar_prefetch=0,
            grid=(Mp // tm_eff,),
            in_specs=[
                pl.BlockSpec((tm_eff, D), lambda i: (i, 0)),  # x rows (streamed)
                pl.BlockSpec((D, D), lambda i: (0, 0)),       # linear weight (bf16, resident)
                pl.BlockSpec((1, D), lambda i: (0, 0)),       # linear bias
                pl.BlockSpec((1, D), lambda i: (0, 0)),       # layernorm gamma (a2)
                pl.BlockSpec((1, D), lambda i: (0, 0)),       # layernorm beta  (b2)
            ],
            out_specs=pl.BlockSpec((tm_eff, D), lambda i: (i, 0)),
        ),
        compiler_params=pltpu.CompilerParams(
            dimension_semantics=("parallel",),
            vmem_limit_bytes=64 * 1024 * 1024,
        ),
        input_output_aliases={0: 0},  # reuse x's buffer for the output
    )(x2, w_bf16, b2, gamma2, beta2)

    return out[:M].reshape(B, S, D)


def _reference(x, gamma, beta, w, b, eps=1e-6):
    # Pure-JAX (f32) mirror of the PyTorch forward (eval-mode dropout).
    mean = jnp.mean(x, axis=-1, keepdims=True)
    centered = x - mean
    d = x.shape[-1]
    std = jnp.sqrt(jnp.sum(centered * centered, axis=-1, keepdims=True) / (d - 1))
    xn = gamma * centered / (std + eps) + beta
    y = jnp.einsum("bsd,de->bse", xn, w) + b
    return x + y


if __name__ == "__main__":
    key = jax.random.PRNGKey(0)
    B, S, D = 2, 8, 128  # batch, seq, hidden ("size" in the module); D lane-dense

    kx, kw, kb = jax.random.split(key, 3)
    x = jax.random.normal(kx, (B, S, D), dtype=jnp.float32)

    # LayerNorm params as in __init__: a2 = ones, b2 = zeros.
    gamma = jnp.ones((D,), dtype=jnp.float32)
    beta = jnp.zeros((D,), dtype=jnp.float32)

    # Deterministic sublayer (Linear D->D) parameters.
    w = jax.random.normal(kw, (D, D), dtype=jnp.float32) * (1.0 / jnp.sqrt(D))
    b = jax.random.normal(kb, (D,), dtype=jnp.float32) * 0.01

    out = sublayer_connection(x, gamma, beta, w, b)
    out = jax.block_until_ready(out)

    ref = _reference(x, gamma, beta, w, b)
    assert out.shape == (B, S, D)
    max_err = float(jnp.max(jnp.abs(out - ref)))
    # bf16 MXU operands -> tolerance loosened vs a pure-f32 reference.
    assert jnp.allclose(out, ref, atol=2e-2, rtol=2e-2), f"mismatch vs reference: {max_err}"

    print("KERNEL_OK")
</pallas_src>

<mosaic_0001>
module attributes {stable_mosaic.version = 11 : i64} {
  func.func @_slc_kernel(%arg0: i32, %arg1: memref<16x128xf32, #tpu.memory_space<vmem>>, %arg2: memref<128x128xbf16, #tpu.memory_space<vmem>>, %arg3: memref<1x128xf32, #tpu.memory_space<vmem>>, %arg4: memref<1x128xf32, #tpu.memory_space<vmem>>, %arg5: memref<1x128xf32, #tpu.memory_space<vmem>>, %arg6: memref<16x128xf32, #tpu.memory_space<vmem>>) attributes {dimension_semantics = [#tpu.dimension_semantics<parallel>], iteration_bounds = array<i64: 1>, scalar_prefetch = 0 : i64, scratch_operands = 0 : i64, tpu.core_type = #tpu.core_type<tc>, window_params = [{transform_indices = @transform_0, window_bounds = array<i64: 16, 128>}, {pipeline_mode = #tpu.pipeline_mode<synchronous>, transform_indices = @transform_1, window_bounds = array<i64: 128, 128>}, {pipeline_mode = #tpu.pipeline_mode<synchronous>, transform_indices = @transform_2, window_bounds = array<i64: 1, 128>}, {pipeline_mode = #tpu.pipeline_mode<synchronous>, transform_indices = @transform_3, window_bounds = array<i64: 1, 128>}, {pipeline_mode = #tpu.pipeline_mode<synchronous>, transform_indices = @transform_4, window_bounds = array<i64: 1, 128>}, {transform_indices = @transform_5, window_bounds = array<i64: 16, 128>}]} {
    %c0 = arith.constant 0 : index
    %c0_0 = arith.constant 0 : index
    %0 = vector.load %arg1[%c0, %c0_0] : memref<16x128xf32, #tpu.memory_space<vmem>>, vector<16x128xf32>
    %cst = arith.constant dense<0.000000e+00> : vector<16xf32>
    %1 = vector.multi_reduction <add>, %0, %cst [1] : vector<16x128xf32> to vector<16xf32>
    %2 = vector.shape_cast %1 : vector<16xf32> to vector<16x1xf32>
    %cst_1 = arith.constant 1.280000e+02 : f32
    %3 = vector.broadcast %cst_1 : f32 to vector<16x1xf32>
    %4 = arith.divf %2, %3 : vector<16x1xf32>
    %5 = vector.broadcast %4 : vector<16x1xf32> to vector<16x128xf32>
    %6 = arith.subf %0, %5 : vector<16x128xf32>
    %7 = arith.mulf %6, %6 : vector<16x128xf32>
    %cst_2 = arith.constant dense<0.000000e+00> : vector<16xf32>
    %8 = vector.multi_reduction <add>, %7, %cst_2 [1] : vector<16x128xf32> to vector<16xf32>
    %9 = vector.shape_cast %8 : vector<16xf32> to vector<16x1xf32>
    %cst_3 = arith.constant 1.270000e+02 : f32
    %10 = vector.broadcast %cst_3 : f32 to vector<16x1xf32>
    %11 = arith.divf %9, %10 : vector<16x1xf32>
    %12 = math.sqrt %11 : vector<16x1xf32>
    %cst_4 = arith.constant 9.99999997E-7 : f32
    %13 = vector.broadcast %cst_4 : f32 to vector<16x1xf32>
    %14 = arith.addf %12, %13 : vector<16x1xf32>
    %15 = tpu.reciprocal %14 {approx = true} : vector<16x1xf32> -> vector<16x1xf32>
    %c0_5 = arith.constant 0 : index
    %c0_6 = arith.constant 0 : index
    %16 = vector.load %arg4[%c0_5, %c0_6] : memref<1x128xf32, #tpu.memory_space<vmem>>, vector<1x128xf32>
    %17 = vector.broadcast %15 : vector<16x1xf32> to vector<16x128xf32>
    %18 = arith.mulf %6, %17 : vector<16x128xf32>
    %19 = vector.broadcast %16 : vector<1x128xf32> to vector<16x128xf32>
    %20 = arith.mulf %19, %18 : vector<16x128xf32>
    %c0_7 = arith.constant 0 : index
    %c0_8 = arith.constant 0 : index
    %21 = vector.load %arg5[%c0_7, %c0_8] : memref<1x128xf32, #tpu.memory_space<vmem>>, vector<1x128xf32>
    %22 = vector.broadcast %21 : vector<1x128xf32> to vector<16x128xf32>
    %23 = arith.addf %20, %22 : vector<16x128xf32>
    %24 = arith.truncf %23 : vector<16x128xf32> to vector<16x128xbf16>
    %c0_9 = arith.constant 0 : index
    %c0_10 = arith.constant 0 : index
    %25 = vector.load %arg2[%c0_9, %c0_10] : memref<128x128xbf16, #tpu.memory_space<vmem>>, vector<128x128xbf16>
    %cst_11 = arith.constant dense<0.000000e+00> : vector<16x128xf32>
    %26 = tpu.matmul %24, %25, %cst_11 {dimension_numbers = #tpu.dot_dimension_numbers<[1], [0], [0], [1], [0, 0, 1, 1], [], []>} : vector<16x128xbf16>, vector<128x128xbf16>, vector<16x128xf32> -> vector<16x128xf32>
    %c0_12 = arith.constant 0 : index
    %c0_13 = arith.constant 0 : index
    %27 = vector.load %arg3[%c0_12, %c0_13] : memref<1x128xf32, #tpu.memory_space<vmem>>, vector<1x128xf32>
    %28 = vector.broadcast %27 : vector<1x128xf32> to vector<16x128xf32>
    %29 = arith.addf %26, %28 : vector<16x128xf32>
    %30 = arith.addf %0, %29 : vector<16x128xf32>
    %c0_14 = arith.constant 0 : index
    %c0_15 = arith.constant 0 : index
    %31 = vector.load %arg6[%c0_14, %c0_15] : memref<16x128xf32, #tpu.memory_space<vmem>>, vector<16x128xf32>
    tpu.vector_store %arg6[%c0_14, %c0_15], %30 {strides = array<i32>} : memref<16x128xf32, #tpu.memory_space<vmem>>, vector<16x128xf32>,
    return
  }
  func.func @transform_0(%arg0: i32) -> (i32, i32) {
    %c0_i32 = arith.constant 0 : i32
    %c0_i32_0 = arith.constant 0 : i32
    return %arg0, %c0_i32 : i32, i32
  }
  func.func @transform_1(%arg0: i32) -> (i32, i32) {
    %c0_i32 = arith.constant 0 : i32
    %c0_i32_0 = arith.constant 0 : i32
    %c0_i32_1 = arith.constant 0 : i32
    return %c0_i32, %c0_i32_0 : i32, i32
  }
  func.func @transform_2(%arg0: i32) -> (i32, i32) {
    %c0_i32 = arith.constant 0 : i32
    %c0_i32_0 = arith.constant 0 : i32
    %c0_i32_1 = arith.constant 0 : i32
    return %c0_i32, %c0_i32_0 : i32, i32
  }
  func.func @transform_3(%arg0: i32) -> (i32, i32) {
    %c0_i32 = arith.constant 0 : i32
    %c0_i32_0 = arith.constant 0 : i32
    %c0_i32_1 = arith.constant 0 : i32
    return %c0_i32, %c0_i32_0 : i32, i32
  }
  func.func @transform_4(%arg0: i32) -> (i32, i32) {
    %c0_i32 = arith.constant 0 : i32
    %c0_i32_0 = arith.constant 0 : i32
    %c0_i32_1 = arith.constant 0 : i32
    return %c0_i32, %c0_i32_0 : i32, i32
  }
  func.func @transform_5(%arg0: i32) -> (i32, i32) {
    %c0_i32 = arith.constant 0 : i32
    %c0_i32_0 = arith.constant 0 : i32
    return %arg0, %c0_i32 : i32, i32
  }
}

</mosaic_0001>

<bundles_post_ra>
// kernel: sublayer_connection.1
= control target key start
LH: loop header
LB: loop body
LE: loop exit
PB: predicated region body
PF: predicated region fallthrough
CT: control target
= control target key end

     0   :  { %10 = vsyncpa [#allocation3], 0  ;;  %s616_s0 = inlined_call_operand.hbm [shape: f32[16,128], index: 0, kind: input, shape index: {}, may-alias: {0,5}]   ;;  %s617_s1 = inlined_call_operand.hbm [shape: bf16[128,128], index: 1, kind: input, shape index: {}]   ;;  %s618_s2 = inlined_call_operand.hbm [shape: f32[1,128], index: 2, kind: input, shape index: {}]   ;;  %s619_s3 = inlined_call_operand.hbm [shape: f32[1,128], index: 3, kind: input, shape index: {}]   ;;  %s620_s4 = inlined_call_operand.hbm [shape: f32[1,128], index: 4, kind: input, shape index: {}]   ;;  %s621_s5 = inlined_call_operand.hbm [shape: f32[16,128], index: 5, kind: output, shape index: {}, may-alias: {0,5}]  }
   0x1   :  { %11 = vsyncpa [#allocation6], 0 }
   0x2   :  { %12 = vsyncpa [#allocation9], 0 }
   0x3   :  { %13 = vsyncpa [#allocation4], 0  ;;  %s486_s18 = smov [#allocation5]   ;;  %s346_s22 = scalar_lea.hbm %s617_s1, 1024 }
   0x4   :  { %s31_s19 = sshll.u32 %s486_s18, 4  ;;  %p347_p0 = scmp.ne.s32.totalorder %s617_s1, %s346_s22  ;;  %s32_s19 = int_to_ptr.vmem [resolvable:$true] %s31_s19 }
   0x5   :  { %p350_p1 = scmp.lt.u32.totalorder %s346_s22, %s617_s1 }
   0x7   :  { %p352_p2 = pnand %p350_p1, %p347_p0 }
   0x9   :  { %355 = shalt.err (!%p352_p2)
}
   0xa   :  { %s356_s27 = scalar_lea.vmem %s32_s19, 1024  ;;  %p361_p4 = scmp.lt.s32.totalorder %s32_s19, %s32_s19 }
   0xb   :  { %p357_p3 = scmp.ne.s32.totalorder %s32_s19, %s356_s27  ;;  %p362_p5 = scmp.lt.s32.totalorder %s356_s27, %s356_s27 }
   0xd   :  { %p363_p6 = por %p362_p5, %p361_p4 }
   0xf   :  { %p364_p7 = pnand %p363_p6, %p357_p3 }
  0x11   :  { %367 = shalt.err (!%p364_p7)
}
  0x12   :  { %s487_s28 = smov 64   ;;  %s488_s29 = smov 4  }
  0x13   :  { %37 = dma.hbm_to_vmem [thread:$0]  %s617_s1, 1024, %s32_s19, [#allocation6], %s487_s28, %s487_s28, %s488_s29  }
  0x14   :  { %s489_s7 = smov [#allocation8]   ;;  %s490_s9 = smov [#allocation2]  }
  0x15   :  { %s54_s8 = sshll.u32 %s489_s7, 4  ;;  %s19_s10 = sshll.u32 %s490_s9, 4  ;;  %s55_s8 = int_to_ptr.vmem [resolvable:$true] %s54_s8  ;;  %s20_s10 = int_to_ptr.vmem [resolvable:$true] %s19_s10 }
  0x16   :  { %s368_s13 = scalar_lea.hbm %s619_s3, 16 }
  0x17   :  { %p369_p8 = scmp.ne.s32.totalorder %s619_s3, %s368_s13  ;;  %p372_p9 = scmp.lt.u32.totalorder %s368_s13, %s619_s3 }
  0x19   :  { %p374_p10 = pnand %p372_p9, %p369_p8 }
  0x1b   :  { %377 = shalt.err (!%p374_p10)
}
  0x1c   :  { %s378_s1 = scalar_lea.vmem %s55_s8, 16  ;;  %s382_s18 = scalar_lea.vmem %s55_s8, 32 }
  0x1d   :  { %p379_p11 = scmp.ne.s32.totalorder %s55_s8, %s378_s1  ;;  %p383_p12 = scmp.lt.s32.totalorder %s55_s8, %s55_s8 }
  0x1e   :  { %p384_p13 = scmp.lt.s32.totalorder %s382_s18, %s378_s1 }
  0x20   :  { %p385_p0 = por %p384_p13, %p383_p12 }
  0x22   :  { %p386_p1 = pnand %p385_p0, %p379_p11 }
  0x24   :  { %389 = shalt.err (!%p386_p1)
}
  0x25   :  { %57 = dma.hbm_to_vmem [thread:$0]  %s619_s3, 16, %s55_s8, [#allocation9]  }
  0x26   :  { %s390_s23 = scalar_lea.hbm %s616_s0, 256 }
  0x27   :  { %p391_p2 = scmp.ne.s32.totalorder %s616_s0, %s390_s23  ;;  %p394_p3 = scmp.lt.u32.totalorder %s390_s23, %s616_s0 }
  0x29   :  { %p396_p4 = pnand %p394_p3, %p391_p2 }
  0x2b   :  { %399 = shalt.err (!%p396_p4)
}
  0x2c   :  { %s400_s28 = scalar_lea.vmem %s20_s10, 256  ;;  %p405_p6 = scmp.lt.s32.totalorder %s20_s10, %s20_s10 }
  0x2d   :  { %p401_p5 = scmp.ne.s32.totalorder %s20_s10, %s400_s28  ;;  %p406_p7 = scmp.lt.s32.totalorder %s400_s28, %s400_s28 }
  0x2f   :  { %p407_p8 = por %p406_p7, %p405_p6 }
  0x31   :  { %p408_p9 = pnand %p407_p8, %p401_p5 }
  0x33   :  { %411 = shalt.err (!%p408_p9)
}
  0x34   :  { %s491_s3 = smov 128   ;;  %s492_s29 = smov 8  }
  0x35   :  { %25 = dma.hbm_to_vmem [thread:$0]  %s616_s0, 256, %s20_s10, [#allocation3], %s491_s3, %s491_s3, %s492_s29  }
  0x36   :  { %s493_s7 = smov [#allocation7]   ;;  %s494_s9 = smov [#allocation10]  }
  0x37   :  { %s44_s8 = sshll.u32 %s493_s7, 4  ;;  %s64_s11 = sshll.u32 %s494_s9, 4  ;;  %s45_s8 = int_to_ptr.vmem [resolvable:$true] %s44_s8  ;;  %s65_s11 = int_to_ptr.vmem [resolvable:$true] %s64_s11 }
  0x38   :  { %s412_s14 = scalar_lea.hbm %s618_s2, 16 }
  0x39   :  { %p413_p10 = scmp.ne.s32.totalorder %s618_s2, %s412_s14  ;;  %p416_p11 = scmp.lt.u32.totalorder %s412_s14, %s618_s2 }
  0x3b   :  { %p418_p12 = pnand %p416_p11, %p413_p10 }
  0x3d   :  { %421 = shalt.err (!%p418_p12)
}
  0x3e   :  { %s422_s0 = scalar_lea.vmem %s45_s8, 16  ;;  %s426_s10 = scalar_lea.vmem %s45_s8, 32 }
  0x3f   :  { %p423_p13 = scmp.ne.s32.totalorder %s45_s8, %s422_s0  ;;  %p427_p0 = scmp.lt.s32.totalorder %s45_s8, %s45_s8 }
  0x40   :  { %p428_p1 = scmp.lt.s32.totalorder %s426_s10, %s422_s0 }
  0x42   :  { %p429_p2 = por %p428_p1, %p427_p0 }
  0x44   :  { %p430_p3 = pnand %p429_p2, %p423_p13 }
  0x46   :  { %433 = shalt.err (!%p430_p3)
}
  0x47   :  { %47 = dma.hbm_to_vmem [thread:$0]  %s618_s2, 16, %s45_s8, [#allocation6]  }
  0x48   :  { %s434_s22 = scalar_lea.hbm %s620_s4, 16 }
  0x49   :  { %p435_p4 = scmp.ne.s32.totalorder %s620_s4, %s434_s22  ;;  %p438_p5 = scmp.lt.u32.totalorder %s434_s22, %s620_s4 }
  0x4b   :  { %p440_p6 = pnand %p438_p5, %p435_p4 }
  0x4d   :  { %443 = shalt.err (!%p440_p6)
}
  0x4e   :  { %s444_s27 = scalar_lea.vmem %s65_s11, 16  ;;  %s448_s28 = scalar_lea.vmem %s65_s11, 32 }
  0x4f   :  { %p445_p7 = scmp.ne.s32.totalorder %s65_s11, %s444_s27  ;;  %p449_p8 = scmp.lt.s32.totalorder %s65_s11, %s65_s11 }
  0x50   :  { %p450_p9 = scmp.lt.s32.totalorder %s448_s28, %s444_s27 }
  0x52   :  { %p451_p10 = por %p450_p9, %p449_p8 }
  0x54   :  { %p452_p11 = pnand %p451_p10, %p445_p7 }
  0x56   :  { %455 = shalt.err (!%p452_p11)
}
  0x57   :  { %67 = dma.hbm_to_vmem [thread:$0]  %s620_s4, 16, %s65_s11, [#allocation9]  }
  0x58   :  { %478 = dma.done.wait [#allocation3], 256  }
  0x59   :  { %479 = vsyncadd [#allocation3], 4294967040 }
  0x5a   :  { %480 = dma.done.wait [#allocation6], 1040  }
  0x5b   :  { %481 = vsyncadd [#allocation6], 4294966256 }
  0x5c   :  { %482 = dma.done.wait [#allocation9], 32  }
  0x5d   :  { %483 = vsyncadd [#allocation9], 4294967264  ;;  %v591_v0 = vld [vmem:[#allocation2] sm:$0xff]  ;;  %v593_v1 = vld [vmem:[#allocation2 + $0x8] sm:$0xff]  ;;  %v495_v11 = vmov 0.0   ;;  %vm496_vm0 = vmmov 0  }
  0x5e   :  { %86 = vadd.xlane.f32.xlu0 %v591_v0  ;;  %v330_v10 = vld [vmem:[#allocation5] sm:$0xff]   ;;  %298 = vmatprep.subr.bf16.mxu0 %v495_v11  ;;  %v331_v12 = vld [vmem:[#allocation5 + $0x8] sm:$0xff]   ;;  %v332_v13 = vld [vmem:[#allocation5 + $0x10] sm:$0xff]   ;;  %s497_s4 = smov [#allocation11]  }
  0x5f   :  { %299 = vmatpush3.bf16.msra.mxu0 %v330_v10  ;;  %v333_v14 = vld [vmem:[#allocation5 + $0x18] sm:$0xff]   ;;  %v334_v15 = vld [vmem:[#allocation5 + $0x20] sm:$0xff]   ;;  %314 = vmatprep.mubr.msk.bf16.mxu0 %vm496_vm0, %v495_v11  ;;  %v335_v16 = vld [vmem:[#allocation5 + $0x28] sm:$0xff]   ;;  %s264_s6 = sshll.u32 %s497_s4, 4  ;;  %s265_s6 = int_to_ptr.vmem [resolvable:$true] %s264_s6 }
  0x60   :  { %300 = vmatprep.subr.bf16.mxu0 %v495_v11  ;;  %v336_v17 = vld [vmem:[#allocation5 + $0x30] sm:$0xff]   ;;  %v337_v18 = vld [vmem:[#allocation5 + $0x38] sm:$0xff]   ;;  %v278_v37 = vld [vmem:[#allocation8] ss:$0 sm:$0xff]  ;;  %s456_s7 = scalar_lea.vmem %s265_s6, 256  ;;  %p461_p13 = scmp.lt.s32.totalorder %s265_s6, %s265_s6 }
  0x61   :  { %v279_v41 = vld [vmem:[#allocation10] ss:$0 sm:$0xff]  ;;  %v280_v46 = vld [vmem:[#allocation7] ss:$0 sm:$0xff]  ;;  %p457_p12 = scmp.ne.s32.totalorder %s265_s6, %s456_s7  ;;  %p462_p0 = scmp.lt.s32.totalorder %s456_s7, %s456_s7 }
  0x62   :  { %88 = vadd.xlane.f32.xlu0 %v593_v1 }
  0x63   :  { %301 = vmatpush3.bf16.msra.mxu0 %v331_v12  ;;  %p463_p1 = por %p462_p0, %p461_p13 }
  0x64   :  { %302 = vmatprep.subr.bf16.mxu0 %v495_v11 }
  0x65   :  { %p464_p2 = pnand %p463_p1, %p457_p12 }
  0x67   :  { %303 = vmatpush3.bf16.msra.mxu0 %v332_v13 }
  0x68   :  { %304 = vmatprep.subr.bf16.mxu0 %v495_v11 }
  0x6b   :  { %305 = vmatpush3.bf16.msra.mxu0 %v333_v14 }
  0x6c   :  { %306 = vmatprep.subr.bf16.mxu0 %v495_v11 }
  0x6f   :  { %307 = vmatpush3.bf16.msra.mxu0 %v334_v15 }
  0x70   :  { %308 = vmatprep.subr.bf16.mxu0 %v495_v11 }
  0x73   :  { %309 = vmatpush3.bf16.msra.mxu0 %v335_v16 }
  0x74   :  { %310 = vmatprep.subr.bf16.mxu0 %v495_v11 }
  0x77   :  { %311 = vmatpush3.bf16.msra.mxu0 %v336_v17 }
  0x78   :  { %312 = vmatprep.subr.bf16.mxu0 %v495_v11 }
  0x7b   :  { %313 = vmatpush3.bf16.msra.mxu0 %v337_v18 }
  0xeb   :  { %v87_v2 = vpop.xlane.xlu0 %86 }
  0xec   :  { %v91_v3 = vmul.f32 0.0078125, %v87_v2 }
  0xee   :  { %v93_v4 = vsub.f32 %v591_v0, %v91_v3 }
  0xef   :  { %v89_v5 = vpop.xlane.xlu0 %88 }
  0xf0   :  { %v92_v6 = vmul.f32 0.0078125, %v89_v5  ;;  %v95_v7 = vmul.f32 %v93_v4, %v93_v4 }
  0xf2   :  { %v94_v8 = vsub.f32 %v593_v1, %v92_v6  ;;  %97 = vadd.xlane.f32.xlu1 %v95_v7 }
  0xf4   :  { %v96_v9 = vmul.f32 %v94_v8, %v94_v8 }
  0xf6   :  { %99 = vadd.xlane.f32.xlu1 %v96_v9 }
 0x17f   :  { %v98_v19 = vpop.xlane.xlu1 %97 }
 0x180   :  { %v102_v20 = vmul.f32 0.007874016, %v98_v19 }
 0x182   :  { %338 = vrsqrt.f32 %v102_v20  ;;  %vm106_vm1 = vcmp.eq.f32.partialorder %v102_v20, inf  ;;  %v109_v25 = vand.u32 2147483648, %v102_v20  ;;  %vm108_vm2 = vcmp.eq.f32.partialorder %v102_v20, 0.0 }
 0x183   :  { %v100_v21 = vpop.xlane.xlu1 %99 }
 0x184   :  { %v103_v22 = vmul.f32 0.007874016, %v100_v21 }
 0x186   :  { %340 = vrsqrt.f32 %v103_v22  ;;  %vm113_vm3 = vcmp.eq.f32.partialorder %v103_v22, inf  ;;  %v116_v31 = vand.u32 2147483648, %v103_v22  ;;  %vm115_vm4 = vcmp.eq.f32.partialorder %v103_v22, 0.0 }
 0x18c   :  { %v339_v23 = vpop.eup %338 }
 0x18d   :  { %v105_v24 = vmul.f32 %v339_v23, %v102_v20 }
 0x18f   :  { %v107_v26 = vsel %vm106_vm1, %v102_v20, %v105_v24 }
 0x190   :  { %v341_v27 = vpop.eup %340  ;;  %v110_v28 = vsel %vm108_vm2, %v109_v25, %v107_v26 }
 0x191   :  { %v118_v29 = vadd.f32 1e-06, %v110_v28  ;;  %v112_v30 = vmul.f32 %v341_v27, %v103_v22 }
 0x193   :  { %v114_v32 = vsel %vm113_vm3, %v103_v22, %v112_v30  ;;  %342 = vrcp.f32 %v118_v29 }
 0x194   :  { %v117_v33 = vsel %vm115_vm4, %v116_v31, %v114_v32 }
 0x195   :  { %v119_v34 = vadd.f32 1e-06, %v117_v33 }
 0x197   :  { %344 = vrcp.f32 %v119_v34 }
 0x19d   :  { %v343_v35 = vpop.eup %342 }
 0x19e   :  { %v123_v36 = vmul.f32 %v343_v35, %v93_v4 }
 0x1a0   :  { %v131_v40 = vmul.f32 %v278_v37, %v123_v36 }
 0x1a1   :  { %v345_v38 = vpop.eup %344 }
 0x1a2   :  { %v124_v39 = vmul.f32 %v345_v38, %v94_v8  ;;  %v140_v43 = vadd.f32 %v279_v41, %v131_v40 }
 0x1a4   :  { %v132_v42 = vmul.f32 %v278_v37, %v124_v39 }
 0x1a6   :  { %v141_v44 = vadd.f32 %v279_v41, %v132_v42 }
 0x1a8   :  { %v142_v45 = vpack.c.bf16 %v141_v44, %v140_v43 }
 0x1aa   :  { %315 = vmatmul.mubr.bf16.vlgmr.msra.gmra.mrb[0].mxu0 %v142_v45 }
 0x27d   :  { %v248_v47 = vpop.f32.mrb[0].mxu0 }
 0x27e   :  { %v249_v48 = vadd.f32 %v280_v46, %v248_v47  ;;  %v316_v49 = vpop.f32.mrb[1].mxu0 }
 0x27f   :  { %v251_v50 = vpop.f32.mrb[2].mxu0 }
 0x280   :  { %v255_v51 = vadd.f32 %v249_v48, %v591_v0  ;;  %v252_v52 = vadd.f32 %v280_v46, %v251_v50  ;;  %v317_v53 = vpop.f32.mrb[3].mxu0 }
 0x282   :  { %257 = vst [vmem:[#allocation11] sm:$0xff] %v255_v51  ;;  %v256_v54 = vadd.f32 %v252_v52, %v593_v1 }
 0x284   :  { %258 = vst [vmem:[#allocation11 + $0x8] sm:$0xff] %v256_v54 }
 0x285   :  { %467 = shalt.err (!%p464_p2)
}
 0x286   :  { %s468_s11 = scalar_lea.hbm %s621_s5, 256 }
 0x287   :  { %p469_p3 = scmp.ne.s32.totalorder %s621_s5, %s468_s11  ;;  %p472_p4 = scmp.lt.u32.totalorder %s468_s11, %s621_s5 }
 0x289   :  { %p474_p5 = pnand %p472_p4, %p469_p3 }
 0x28b   :  { %477 = shalt.err (!%p474_p5)
}
 0x28c   :  { %270 = dma.vmem_to_hbm [thread:$0]  %s265_s6, 256, %s621_s5, [#allocation4], %s491_s3, %s491_s3, %s492_s29  }
 0x28d   :  { %484 = dma.done.wait [#allocation4], 256  }
 0x28e   :  { %485 = vsyncadd [#allocation4], 4294967040 }
 0x28f   :  { %274 = vsyncpa [#allocation3], 1 }
 0x290   :  { %275 = vsyncpa [#allocation6], 1 }
 0x291   :  { %276 = vsyncpa [#allocation9], 1 }
 0x292   :  { %277 = vsyncpa [#allocation4], 1 }

</bundles_post_ra>
